<compile_context>
chip_gen: v7x
topology: tpu7x:2x2x1
jax: 0.10.0
libtpu: 0.0.40
codegen_flags: <defaults>
</compile_context>

<pallas_src>
import functools

import jax
import jax.numpy as jnp
import numpy as np
from jax.experimental import pallas as pl
from jax.experimental.pallas import tpu as pltpu


def dilate_attention_kernel(q_ref, k_ref, v_ref, o_ref, *, kernel_size, dilation, scale):
    """One (batch, head) pair. Refs are (1, head_dim, N) VMEM tiles, N lane-dense."""
    K = kernel_size
    pad = dilation * (K - 1) // 2
    _, hd, N = q_ref.shape

    q = q_ref[0]  # (hd, N) in the input dtype; multiplies stay in that dtype,
    k = k_ref[0]  # accumulation below is f32.
    v = v_ref[0]

    # Zero-pad k/v by `pad` lanes on each side (VMEM only, no extra HBM traffic),
    # so every dilated tap is a static lane slice and out-of-range positions
    # contribute score 0 / value 0, exactly like the unfold's zero padding.
    if pad > 0:
        kp = jnp.concatenate(
            [jnp.zeros((hd, pad), k.dtype), k, jnp.zeros((hd, pad), k.dtype)], axis=-1)
        vp = jnp.concatenate(
            [jnp.zeros((hd, pad), v.dtype), v, jnp.zeros((hd, pad), v.dtype)], axis=-1)
    else:
        kp, vp = k, v

    # Scores of the K "real" unfold taps: (1, N) f32 rows (sublane reduce over hd).
    scores = []
    for kh in range(K):
        k_sh = kp[:, kh * dilation:kh * dilation + N]                     # (hd, N)
        s = jnp.sum(q * k_sh, axis=0, keepdims=True, dtype=jnp.float32) * scale
        scores.append(s)

    # Running max also covers the implicit K*K-K zero-score columns.
    m = jnp.zeros_like(scores[0])
    for s in scores:
        m = jnp.maximum(m, s)

    n_zero_cols = K * K - K
    denom = n_zero_cols * jnp.exp(-m) if n_zero_cols else jnp.zeros_like(m)
    acc = jnp.zeros((hd, N), jnp.float32)
    for kh, s in enumerate(scores):      # fused: only one shifted v tile live at a time
        e = jnp.exp(s - m)               # (1, N) f32
        denom = denom + e
        v_sh = vp[:, kh * dilation:kh * dilation + N]
        acc = acc + e * v_sh.astype(jnp.float32)   # broadcast over sublanes

    inv = pl.reciprocal(denom, approx=True)        # EUP slot (otherwise idle)
    inv = inv * (2.0 - denom * inv)                # one Newton step -> ~f32 accuracy
    o_ref[0] = (acc * inv).astype(o_ref.dtype)


def dilate_attention(q, k, v, head_dim, kernel_size=3, dilation=1, qk_scale=None,
                     vmem_limit_bytes=None):
    """q, k, v: (B, d, N) -> out: (B, N, d), matching DilateAttention.forward."""
    B, d, N = q.shape
    assert d % head_dim == 0, "d must be divisible by head_dim"
    nh = d // head_dim
    scale = qk_scale if qk_scale is not None else head_dim ** (-0.5)

    kern = functools.partial(dilate_attention_kernel, kernel_size=kernel_size,
                             dilation=dilation, scale=scale)

    # Native-layout blocks: one (batch, head) per grid step; head_dim (multiple
    # of 8) on sublanes, N lane-dense.
    blk = pl.BlockSpec((1, head_dim, N), lambda b, h: (b, h, 0))

    params = dict(dimension_semantics=("parallel", "parallel"))
    if vmem_limit_bytes is not None:
        params["vmem_limit_bytes"] = vmem_limit_bytes
    # NOTE: for very large N (high-res Dacformer on v7x/v5e with small scoped
    # VMEM), tile N with a `pad`-wide halo; at typical N the whole-N block fits
    # comfortably in the default scoped-VMEM budget.

    out_bdn = pl.pallas_call(
        kern,
        out_shape=jax.ShapeDtypeStruct((B, d, N), q.dtype),
        grid=(B, nh),
        in_specs=[blk, blk, blk],
        out_specs=blk,
        compiler_params=pltpu.CompilerParams(**params),
    )(q, k, v)

    # Single layout fixup: (B, d, N) -> (B, N, d) == (attn @ v).transpose(1,2).reshape.
    return out_bdn.transpose(0, 2, 1)


def dilate_attention_ref(q, k, v, head_dim, kernel_size=3, dilation=1, qk_scale=None):
    """Pure-JAX reference with the full K*K unfold (including the zero columns)."""
    B, d, N = q.shape
    nh = d // head_dim
    K = kernel_size
    scale = qk_scale if qk_scale is not None else head_dim ** (-0.5)
    pad = dilation * (K - 1) // 2

    def shift(x, off):  # shift along N: y[..., n] = x[..., n+off] (zero OOB)
        if off == 0:
            return x
        z = jnp.zeros_like(x)
        if off > 0:
            return z.at[:, :, : N - off].set(x[:, :, off:])
        return z.at[:, :, -off:].set(x[:, :, : N + off])

    def unfold(x):  # (B, d, N) -> (B, nh, head_dim, K*K, N), NCHW unfold with W=1
        cols = []
        for kh in range(K):
            off = dilation * kh - pad
            xs = shift(x, off)
            for kw in range(K):
                cols.append(xs if kw == (K - 1) // 2 else jnp.zeros_like(xs))
        u = jnp.stack(cols, axis=2)  # (B, d, K*K, N)
        return u.reshape(B, nh, head_dim, K * K, N)

    qh = q.reshape(B, nh, head_dim, N)
    ku, vu = unfold(k), unfold(v)
    attn = jnp.einsum("bhdn,bhdjn->bhnj", qh, ku) * scale
    attn = jax.nn.softmax(attn, axis=-1)
    out = jnp.einsum("bhnj,bhdjn->bhnd", attn, vu)
    return out.transpose(0, 2, 1, 3).reshape(B, N, d)


if __name__ == "__main__":
    key = jax.random.PRNGKey(0)
    B, head_dim, nh, N = 2, 8, 4, 16
    d = head_dim * nh
    kernel_size, dilation = 3, 2

    kq, kk, kv = jax.random.split(key, 3)
    q = jax.random.normal(kq, (B, d, N), jnp.float32)
    k = jax.random.normal(kk, (B, d, N), jnp.float32)
    v = jax.random.normal(kv, (B, d, N), jnp.float32)

    out = dilate_attention(q, k, v, head_dim=head_dim,
                           kernel_size=kernel_size, dilation=dilation)
    out = jax.block_until_ready(out)

    ref = dilate_attention_ref(q, k, v, head_dim=head_dim,
                               kernel_size=kernel_size, dilation=dilation)
    assert out.shape == (B, N, d)
    np.testing.assert_allclose(np.asarray(out), np.asarray(ref), atol=1e-4, rtol=1e-4)
    print("KERNEL_OK")
</pallas_src>

<mosaic_0001>
module attributes {stable_mosaic.version = 11 : i64} {
  func.func @dilate_attention_kernel(%arg0: i32, %arg1: i32, %arg2: memref<1x8x16xf32, #tpu.memory_space<vmem>>, %arg3: memref<1x8x16xf32, #tpu.memory_space<vmem>>, %arg4: memref<1x8x16xf32, #tpu.memory_space<vmem>>, %arg5: memref<1x8x16xf32, #tpu.memory_space<vmem>>) attributes {dimension_semantics = [#tpu.dimension_semantics<parallel>, #tpu.dimension_semantics<parallel>], iteration_bounds = array<i64: 2, 4>, scalar_prefetch = 0 : i64, scratch_operands = 0 : i64, tpu.core_type = #tpu.core_type<tc>, window_params = [{transform_indices = @transform_0, window_bounds = array<i64: 1, 8, 16>}, {transform_indices = @transform_1, window_bounds = array<i64: 1, 8, 16>}, {transform_indices = @transform_2, window_bounds = array<i64: 1, 8, 16>}, {transform_indices = @transform_3, window_bounds = array<i64: 1, 8, 16>}]} {
    %c0 = arith.constant 0 : index
    %c0_0 = arith.constant 0 : index
    %c0_1 = arith.constant 0 : index
    %0 = vector.load %arg2[%c0, %c0_0, %c0_1] : memref<1x8x16xf32, #tpu.memory_space<vmem>>, vector<1x8x16xf32>
    %1 = vector.shape_cast %0 : vector<1x8x16xf32> to vector<8x16xf32>
    %c0_2 = arith.constant 0 : index
    %c0_3 = arith.constant 0 : index
    %c0_4 = arith.constant 0 : index
    %2 = vector.load %arg3[%c0_2, %c0_3, %c0_4] : memref<1x8x16xf32, #tpu.memory_space<vmem>>, vector<1x8x16xf32>
    %3 = vector.shape_cast %2 : vector<1x8x16xf32> to vector<8x16xf32>
    %c0_5 = arith.constant 0 : index
    %c0_6 = arith.constant 0 : index
    %c0_7 = arith.constant 0 : index
    %4 = vector.load %arg4[%c0_5, %c0_6, %c0_7] : memref<1x8x16xf32, #tpu.memory_space<vmem>>, vector<1x8x16xf32>
    %5 = vector.shape_cast %4 : vector<1x8x16xf32> to vector<8x16xf32>
    %cst = arith.constant 0.000000e+00 : f32
    %6 = vector.broadcast %cst : f32 to vector<8x2xf32>
    %cst_8 = arith.constant 0.000000e+00 : f32
    %7 = vector.broadcast %cst_8 : f32 to vector<8x2xf32>
    %8 = tpu.concatenate %6, %3, %7 in 1 : vector<8x2xf32>, vector<8x16xf32>, vector<8x2xf32> -> vector<8x20xf32>
    %cst_9 = arith.constant 0.000000e+00 : f32
    %9 = vector.broadcast %cst_9 : f32 to vector<8x2xf32>
    %cst_10 = arith.constant 0.000000e+00 : f32
    %10 = vector.broadcast %cst_10 : f32 to vector<8x2xf32>
    %11 = tpu.concatenate %9, %5, %10 in 1 : vector<8x2xf32>, vector<8x16xf32>, vector<8x2xf32> -> vector<8x20xf32>
    %12 = vector.extract_strided_slice %8 {offsets = [0, 0], sizes = [8, 16], strides = [1, 1]} : vector<8x20xf32> to vector<8x16xf32>
    %13 = arith.mulf %1, %12 : vector<8x16xf32>
    %cst_11 = arith.constant dense<0.000000e+00> : vector<16xf32>
    %14 = vector.multi_reduction <add>, %13, %cst_11 [0] : vector<8x16xf32> to vector<16xf32>
    %15 = vector.shape_cast %14 : vector<16xf32> to vector<1x16xf32>
    %cst_12 = arith.constant 0.353553385 : f32
    %16 = vector.broadcast %cst_12 : f32 to vector<1x16xf32>
    %17 = arith.mulf %15, %16 : vector<1x16xf32>
    %18 = vector.extract_strided_slice %8 {offsets = [0, 2], sizes = [8, 16], strides = [1, 1]} : vector<8x20xf32> to vector<8x16xf32>
    %19 = arith.mulf %1, %18 : vector<8x16xf32>
    %cst_13 = arith.constant dense<0.000000e+00> : vector<16xf32>
    %20 = vector.multi_reduction <add>, %19, %cst_13 [0] : vector<8x16xf32> to vector<16xf32>
    %21 = vector.shape_cast %20 : vector<16xf32> to vector<1x16xf32>
    %cst_14 = arith.constant 0.353553385 : f32
    %22 = vector.broadcast %cst_14 : f32 to vector<1x16xf32>
    %23 = arith.mulf %21, %22 : vector<1x16xf32>
    %24 = vector.extract_strided_slice %8 {offsets = [0, 4], sizes = [8, 16], strides = [1, 1]} : vector<8x20xf32> to vector<8x16xf32>
    %25 = arith.mulf %1, %24 : vector<8x16xf32>
    %cst_15 = arith.constant dense<0.000000e+00> : vector<16xf32>
    %26 = vector.multi_reduction <add>, %25, %cst_15 [0] : vector<8x16xf32> to vector<16xf32>
    %27 = vector.shape_cast %26 : vector<16xf32> to vector<1x16xf32>
    %cst_16 = arith.constant 0.353553385 : f32
    %28 = vector.broadcast %cst_16 : f32 to vector<1x16xf32>
    %29 = arith.mulf %27, %28 : vector<1x16xf32>
    %cst_17 = arith.constant 0.000000e+00 : f32
    %30 = vector.broadcast %cst_17 : f32 to vector<1x16xf32>
    %31 = arith.maximumf %30, %17 : vector<1x16xf32>
    %32 = arith.maximumf %31, %23 : vector<1x16xf32>
    %33 = arith.maximumf %32, %29 : vector<1x16xf32>
    %cst_18 = arith.constant 0.000000e+00 : f32
    %34 = vector.broadcast %cst_18 : f32 to vector<1x16xf32>
    %35 = arith.subf %34, %33 : vector<1x16xf32>
    %36 = math.exp %35 : vector<1x16xf32>
    %cst_19 = arith.constant 6.000000e+00 : f32
    %37 = vector.broadcast %cst_19 : f32 to vector<1x16xf32>
    %38 = arith.mulf %37, %36 : vector<1x16xf32>
    %cst_20 = arith.constant 0.000000e+00 : f32
    %39 = vector.broadcast %cst_20 : f32 to vector<8x16xf32>
    %40 = arith.subf %17, %33 : vector<1x16xf32>
    %41 = math.exp %40 : vector<1x16xf32>
    %42 = arith.addf %38, %41 : vector<1x16xf32>
    %43 = vector.extract_strided_slice %11 {offsets = [0, 0], sizes = [8, 16], strides = [1, 1]} : vector<8x20xf32> to vector<8x16xf32>
    %44 = vector.broadcast %41 : vector<1x16xf32> to vector<8x16xf32>
    %45 = arith.mulf %44, %43 : vector<8x16xf32>
    %46 = arith.addf %39, %45 : vector<8x16xf32>
    %47 = arith.subf %23, %33 : vector<1x16xf32>
    %48 = math.exp %47 : vector<1x16xf32>
    %49 = arith.addf %42, %48 : vector<1x16xf32>
    %50 = vector.extract_strided_slice %11 {offsets = [0, 2], sizes = [8, 16], strides = [1, 1]} : vector<8x20xf32> to vector<8x16xf32>
    %51 = vector.broadcast %48 : vector<1x16xf32> to vector<8x16xf32>
    %52 = arith.mulf %51, %50 : vector<8x16xf32>
    %53 = arith.addf %46, %52 : vector<8x16xf32>
    %54 = arith.subf %29, %33 : vector<1x16xf32>
    %55 = math.exp %54 : vector<1x16xf32>
    %56 = arith.addf %49, %55 : vector<1x16xf32>
    %57 = vector.extract_strided_slice %11 {offsets = [0, 4], sizes = [8, 16], strides = [1, 1]} : vector<8x20xf32> to vector<8x16xf32>
    %58 = vector.broadcast %55 : vector<1x16xf32> to vector<8x16xf32>
    %59 = arith.mulf %58, %57 : vector<8x16xf32>
    %60 = arith.addf %53, %59 : vector<8x16xf32>
    %61 = tpu.reciprocal %56 {approx = true} : vector<1x16xf32> -> vector<1x16xf32>
    %62 = arith.mulf %56, %61 : vector<1x16xf32>
    %cst_21 = arith.constant 2.000000e+00 : f32
    %63 = vector.broadcast %cst_21 : f32 to vector<1x16xf32>
    %64 = arith.subf %63, %62 : vector<1x16xf32>
    %65 = arith.mulf %61, %64 : vector<1x16xf32>
    %66 = vector.broadcast %65 : vector<1x16xf32> to vector<8x16xf32>
    %67 = arith.mulf %60, %66 : vector<8x16xf32>
    %c0_22 = arith.constant 0 : index
    %c0_23 = arith.constant 0 : index
    %c0_24 = arith.constant 0 : index
    %68 = vector.load %arg5[%c0_22, %c0_23, %c0_24] : memref<1x8x16xf32, #tpu.memory_space<vmem>>, vector<1x8x16xf32>
    %69 = vector.shape_cast %68 : vector<1x8x16xf32> to vector<8x16xf32>
    %70 = vector.shape_cast %67 : vector<8x16xf32> to vector<1x8x16xf32>
    tpu.vector_store %arg5[%c0_22, %c0_23, %c0_24], %70 {strides = array<i32>} : memref<1x8x16xf32, #tpu.memory_space<vmem>>, vector<1x8x16xf32>,
    return
  }
  func.func @transform_0(%arg0: i32, %arg1: i32) -> (i32, i32, i32) {
    %c0_i32 = arith.constant 0 : i32
    %c0_i32_0 = arith.constant 0 : i32
    return %arg0, %arg1, %c0_i32 : i32, i32, i32
  }
  func.func @transform_1(%arg0: i32, %arg1: i32) -> (i32, i32, i32) {
    %c0_i32 = arith.constant 0 : i32
    %c0_i32_0 = arith.constant 0 : i32
    return %arg0, %arg1, %c0_i32 : i32, i32, i32
  }
  func.func @transform_2(%arg0: i32, %arg1: i32) -> (i32, i32, i32) {
    %c0_i32 = arith.constant 0 : i32
    %c0_i32_0 = arith.constant 0 : i32
    return %arg0, %arg1, %c0_i32 : i32, i32, i32
  }
  func.func @transform_3(%arg0: i32, %arg1: i32) -> (i32, i32, i32) {
    %c0_i32 = arith.constant 0 : i32
    %c0_i32_0 = arith.constant 0 : i32
    return %arg0, %arg1, %c0_i32 : i32, i32, i32
  }
}

</mosaic_0001>

<bundles_post_ra>
// kernel: tpu_custom_call.1
= control target key start
LH: loop header
LB: loop body
LE: loop exit
PB: predicated region body
PF: predicated region fallthrough
CT: control target
= control target key end

     0   :  { %s607_s12 = smov 0   ;;  %s609_s13 = smov 0   ;;  %s674_s0 = inlined_call_operand.vmem [shape: f32[2,32,16], index: 0, kind: input, shape index: {}]   ;;  %s675_s1 = inlined_call_operand.vmem [shape: f32[2,32,16], index: 1, kind: input, shape index: {}]   ;;  %s676_s2 = inlined_call_operand.vmem [shape: f32[2,32,16], index: 2, kind: input, shape index: {}]   ;;  %s677_s3 = inlined_call_operand.vmem [shape: f32[2,32,16], index: 3, kind: output, shape index: {}]  }
   0x1   :  { %s611_s14 = smov 0   ;;  %s613_s15 = smov 0  }
   0x2   :  { %s615_s16 = smov 0  }
   0x3 LB: > { %s22_s17 = sadd.s32 1, %s574_s14  ;;  %s25_s18 = sadd.s32 1, %s578_s15  ;;  %s582_s16 = sphi %s615_s16, %s13_s16   ;;  %s578_s15 = sphi %s613_s15, %s681_s15   ;;  %s574_s14 = sphi %s611_s14, %s680_s14   ;;  %s570_s13 = sphi %s609_s13, %s679_s13   ;;  %s566_s12 = sphi %s607_s12, %s678_s12  }
   0x4   : > { %p23_p0 = scmp.ge.s32.totalorder %s22_s17, 4  ;;  %p480_p1 = scmp.ge.s32.totalorder %s582_s16, 1 }
   0x5   : > { %p186_p2 = scmp.lt.s32.totalorder %s582_s16, 9 }
   0x6   : > { %s683_s17 = smov (%p23_p0, %s22_s17), 0  ;;  %s685_s18 = smov (!%p23_p0, %s25_s18), %s578_s15 }
   0x7   : > { %p187_p3 = pnand %p480_p1, %p186_p2  ;;  %p27_p4 = scmp.ge.s32.totalorder %s685_s18, 2 }
   0x8   : > { %p232_p5 = scmp.lt.s32.totalorder (!%p187_p3), %s570_s13, 1  ;;  %p234_p6 = scmp.lt.s32.totalorder (!%p187_p3), %s566_s12, 3  ;;  %vm271_vm0 = vcmask (!%p187_p3), 15360   ;;  %vm273_vm1 = vcmask (!%p187_p3), 146432   ;;  %vm282_vm2 = vcmask (!%p187_p3), 130048  }
   0x9   : > { %s687_s18 = smov (%p27_p4, %s685_s18), 0  ;;  %190 = sbr.rel (%p187_p3) target bundleno = 320 (0x140), region = 32 }
   0xa   : > { %s584_s28 = smov (!%p187_p3), 2   ;;  %s585_s5 = smov (!%p187_p3), 126  }
   0xb   : > { %s586_s6 = smov (!%p187_p3), 124  }
  0x10   : > { %s689_s13 = smov (!%p232_p5, %s570_s13), 1  ;;  %s691_s12 = smov (!%p234_p6, %s566_s12), 3 }
  0x11   : > { %s481_s19 = sshll.u32 %s689_s13, 2 }
  0x12   : > { %s237_s20 = sadd.s32 %s481_s19, %s691_s12 }
  0x13   : > { %s637_s21 = sshll.u32 %s237_s20, 3 }
  0x14   : > { %s247_s24 = scalar_lea.vmem %s675_s1, %s637_s21  ;;  %s255_s27 = scalar_lea.vmem %s676_s2, %s637_s21 }
  0x15   : > { %v265_v0 = vld [vmem:[%s247_s24] sm:$0xff]  ;;  %s239_s4 = scalar_lea.vmem %s674_s0, %s637_s21  ;;  %s263_s9 = scalar_lea.vmem %s677_s3, %s637_s21 }
  0x16   : > { %268 = vrot.lane.b32.xlu0 %v265_v0, %s584_s28  ;;  %v266_v1 = vld [vmem:[%s255_s27] sm:$0xff] }
  0x17   : > { %v264_v3 = vld [vmem:[%s239_s4] sm:$0xff] }
  0x1a   : > { %276 = vrot.lane.b32.xlu0 %v266_v1, %s584_s28 }
  0x88   : > { %v269_v2 = vpop.permute.xlu0 %268 }
  0x89   : > { %v272_v4 = vsel %vm271_vm0, 0.0, %v269_v2 }
  0x8a   : > { %v274_v5 = vsel %vm273_vm1, %v272_v4, 0.0 }
  0x8b   : > { %292 = vrot.lane.b32.xlu1 %v274_v5, %s585_s5  ;;  %v281_v6 = vmul.f32 %v274_v5, %v264_v3 }
  0x8c   : > { %v277_v7 = vpop.permute.xlu0 %276 }
  0x8d   : > { %v279_v8 = vsel %vm271_vm0, 0.0, %v277_v7  ;;  %v283_v10 = vsel %vm282_vm2, %v281_v6, 0.0 }
  0x8e   : > { %v280_v9 = vsel %vm273_vm1, %v279_v8, 0.0  ;;  %v284_v11 = vrot.slane %v283_v10, 4 }
  0x8f   : > { %304 = vrot.lane.b32.xlu1 %v274_v5, %s586_s6  ;;  %334 = vrot.lane.b32.xlu0 %v280_v9, %s585_s5 }
  0x90   : > { %v285_v12 = vadd.f32 %v284_v11, %v283_v10 }
  0x92   : > { %v286_v13 = vrot.slane %v285_v12, 2 }
  0x93   : > { %343 = vrot.lane.b32.xlu1 %v280_v9, %s586_s6 }
  0x94   : > { %v287_v15 = vadd.f32 %v286_v13, %v285_v12 }
  0x96   : > { %v288_v18 = vrot.slane %v287_v15, 1 }
  0x98   : > { %v289_v24 = vadd.f32 %v288_v18, %v287_v15 }
  0x9a   : > { %v290_v29 = vmul.f32 0.35355338, %v289_v24 }
  0x9c   : > { %v316_v35 = vmax.f32 %v290_v29, 0.0 }
  0xfd   : > { %v293_v14 = vpop.permute.xlu1 %292 }
  0xfe   : > { %v295_v16 = vmul.f32 %v293_v14, %v264_v3 }
 0x100   : > { %v296_v17 = vsel %vm282_vm2, %v295_v16, 0.0 }
 0x101   : > { %v297_v19 = vrot.slane %v296_v17, 4  ;;  %v305_v20 = vpop.permute.xlu1 %304  ;;  %v335_v51 = vpop.permute.xlu0 %334 }
 0x102   : > { %v307_v21 = vmul.f32 %v305_v20, %v264_v3 }
 0x103   : > { %v298_v22 = vadd.f32 %v297_v19, %v296_v17 }
 0x104   : > { %v308_v23 = vsel %vm282_vm2, %v307_v21, 0.0 }
 0x105   : > { %v299_v25 = vrot.slane %v298_v22, 2  ;;  %v309_v26 = vrot.slane %v308_v23, 4  ;;  %v344_v55 = vpop.permute.xlu1 %343 }
 0x107   : > { %v300_v27 = vadd.f32 %v299_v25, %v298_v22  ;;  %v310_v28 = vadd.f32 %v309_v26, %v308_v23 }
 0x109   : > { %v301_v30 = vrot.slane %v300_v27, 1  ;;  %v311_v31 = vrot.slane %v310_v28, 2 }
 0x10b   : > { %v302_v32 = vadd.f32 %v301_v30, %v300_v27  ;;  %v312_v33 = vadd.f32 %v311_v31, %v310_v28 }
 0x10d   : > { %v303_v34 = vmul.f32 0.35355338, %v302_v32  ;;  %v313_v36 = vrot.slane %v312_v33, 1 }
 0x10f   : > { %v317_v37 = vmax.f32 %v316_v35, %v303_v34  ;;  %v314_v38 = vadd.f32 %v313_v36, %v312_v33 }
 0x111   : > { %v315_v39 = vmul.f32 0.35355338, %v314_v38 }
 0x113   : > { %v318_v40 = vmax.f32 %v317_v37, %v315_v39 }
 0x115   : > { %v319_v41 = vsub.f32 0.0, %v318_v40  ;;  %v339_v42 = vsub.f32 %v315_v39, %v318_v40  ;;  %v323_v43 = vsub.f32 %v290_v29, %v318_v40  ;;  %v329_v44 = vsub.f32 %v303_v34, %v318_v40 }
 0x117   : > { %v320_v45 = vmul.f32 1.442695, %v319_v41  ;;  %v340_v46 = vmul.f32 1.442695, %v339_v42  ;;  %v324_v47 = vmul.f32 1.442695, %v323_v43 }
 0x118   : > { %v330_v48 = vmul.f32 1.442695, %v329_v44 }
 0x119   : > { %534 = vpow2.f32 %v320_v45 }
 0x11a   : > { %536 = vpow2.f32 %v340_v46 }
 0x11b   : > { %538 = vpow2.f32 %v324_v47 }
 0x11c   : > { %540 = vpow2.f32 %v330_v48 }
 0x123   : > { %v535_v49 = vpop.eup %534 }
 0x124   : > { %v537_v50 = vpop.eup %536  ;;  %v322_v52 = vmul.f32 6.0, %v535_v49 }
 0x125   : > { %v539_v53 = vpop.eup %538  ;;  %v346_v60 = vmul.f32 %v537_v50, %v344_v55 }
 0x126   : > { %v541_v54 = vpop.eup %540  ;;  %v326_v56 = vadd.f32 %v539_v53, %v322_v52  ;;  %v327_v57 = vmul.f32 %v539_v53, %v280_v9 }
 0x127   : > { %v337_v58 = vmul.f32 %v541_v54, %v335_v51 }
 0x128   : > { %v332_v59 = vadd.f32 %v541_v54, %v326_v56 }
 0x129   : > { %v338_v61 = vadd.f32 %v337_v58, %v327_v57 }
 0x12a   : > { %v342_v62 = vadd.f32 %v537_v50, %v332_v59 }
 0x12b   : > { %v347_v63 = vadd.f32 %v346_v60, %v338_v61 }
 0x12c   : > { %542 = vrcp.f32 %v342_v62 }
 0x136   : > { %v543_v0 = vpop.eup %542 }
 0x137   : > { %v349_v1 = vmul.f32 %v543_v0, %v342_v62 }
 0x139   : > { %v350_v2 = vsub.f32 2.0, %v349_v1 }
 0x13b   : > { %v351_v3 = vmul.f32 %v543_v0, %v350_v2 }
 0x13d   : > { %v352_v4 = vmul.f32 %v351_v3, %v347_v63 }
 0x13f   : > { %353 = vst.msk [vmem:[%s263_s9] sm:$0xff] %vm282_vm2, %v352_v4 }
 0x140 PF: > { %s13_s16 = sadd.s32 1, %s582_s16   ;;  %s678_s12 = smov %s574_s14 }
 0x141   : > { %p10_p7 = scmp.ge.s32.totalorder %s13_s16, 10   ;;  %s679_s13 = smov %s578_s15 }
 0x142   : > { %s680_s14 = smov %s683_s17  ;;  %s681_s15 = smov %s687_s18 }
 0x143   :  { %12 = sbr.rel (!%p10_p7) target bundleno = 3 (0x3), region = 68 }

</bundles_post_ra>
